<compile_context>
chip_gen: v5e
topology: v5e:2x2
jax: 0.10.0
libtpu: 0.0.40
codegen_flags: <defaults>
</compile_context>

<pallas_src>
import numpy as np

import jax
import jax.numpy as jnp
from jax.experimental import pallas as pl
from jax.experimental.pallas import tpu as pltpu


# ------------------------------ Pallas kernel ------------------------------ #

def _rope_broadcast_kernel(f_cos_ref, f_sin_ref, p_cos_ref, p_sin_ref,
                           cos_ref, sin_ref):
    """Pure broadcast/add body — no transcendentals, no div, no concat.

    f_*_ref: (tile_f, 1, ppw*dh)  per-frame row (t-channels filled, h/w zero)
    p_*_ref: (pph,  ppw*dh)       per-(h) row   (h/w channels filled, t zero)
    out:     (tile_f, pph, ppw*dh)
    """
    cos_ref[...] = f_cos_ref[...] + p_cos_ref[...][None, :, :]
    sin_ref[...] = f_sin_ref[...] + p_sin_ref[...][None, :, :]


# -------------------------------- Wrappers --------------------------------- #

def make_rope_params(attention_head_dim, patch_size, max_seq_len, theta=10000.0):
    """Equivalent of the module __init__: per-axis cos/sin tables.

    Angles are computed in float64 (like the reference) and only the final
    cos/sin values are cast to float32 — so the kernel output matches the
    float64 reference to f32 rounding even at large positions.
    """
    h_dim = w_dim = 2 * (attention_head_dim // 6)
    t_dim = attention_head_dim - h_dim - w_dim

    def angles(dim):
        inv = 1.0 / (theta ** (np.arange(0, dim, 2)[: dim // 2].astype(np.float64) / dim))
        return np.outer(np.arange(max_seq_len, dtype=np.float64), inv)   # (L, dim//2)

    ang_t, ang_h, ang_w = angles(t_dim), angles(h_dim), angles(w_dim)
    return {
        "cos": {"t": np.cos(ang_t).astype(np.float32),
                "h": np.cos(ang_h).astype(np.float32),
                "w": np.cos(ang_w).astype(np.float32)},
        "sin": {"t": np.sin(ang_t).astype(np.float32),
                "h": np.sin(ang_h).astype(np.float32),
                "w": np.sin(ang_w).astype(np.float32)},
        "dims": (t_dim, h_dim, w_dim),
        "attention_head_dim": attention_head_dim,
        "patch_size": patch_size,
        "max_seq_len": max_seq_len,
        "theta": theta,
    }


def wan_rotary_pos_embed(params, hidden_states, tile_frames=None):
    """Forward pass. Returns (cos, sin), each (1, 1, S, head_dim//2) float32.

    The module's complex output equals cos + 1j * sin.
    """
    B, C, F_, H, W = hidden_states.shape
    p_t, p_h, p_w = params["patch_size"]
    ppf, pph, ppw = F_ // p_t, H // p_h, W // p_w
    assert max(ppf, pph, ppw) <= params["max_seq_len"]
    t_dim, h_dim, w_dim = params["dims"]
    t_half, h_half, w_half = t_dim // 2, h_dim // 2, w_dim // 2
    dh = t_half + h_half + w_half            # attention_head_dim // 2
    S = ppf * pph * ppw
    lane = ppw * dh                          # lane-dense output row width

    # ---- host (trace-time) assembly of the tiny unique-position tables ---- #
    def build(tab):
        frame = np.zeros((ppf, dh), np.float32)
        frame[:, :t_half] = tab["t"][:ppf]                       # t-channels only
        frame = np.ascontiguousarray(np.tile(frame, (1, ppw))).reshape(ppf, 1, lane)

        plane = np.zeros((pph, ppw, dh), np.float32)
        plane[:, :, t_half:t_half + h_half] = tab["h"][:pph][:, None, :]
        plane[:, :, t_half + h_half:] = tab["w"][:ppw][None, :, :]
        return jnp.asarray(frame), jnp.asarray(plane.reshape(pph, lane))

    f_cos, p_cos = build(params["cos"])
    f_sin, p_sin = build(params["sin"])

    # ---- tiling: big frame tiles (~2 MiB), but keep >= 2 grid steps ------- #
    row_bytes = pph * lane * 4
    if tile_frames is None:
        tile_frames = max(1, min(ppf, (2 << 20) // max(row_bytes, 1)))
        if ppf > 1:
            tile_frames = min(tile_frames, -(-ppf // 2))   # at least 2 steps (v7x)
    tile_frames = min(tile_frames, ppf)
    grid = (pl.cdiv(ppf, tile_frames),)

    out_shape = jax.ShapeDtypeStruct((ppf, pph, lane), jnp.float32)
    out_spec = pl.BlockSpec((tile_frames, pph, lane), lambda i: (i, 0, 0))

    cos, sin = pl.pallas_call(
        _rope_broadcast_kernel,
        out_shape=(out_shape, out_shape),
        grid=grid,
        in_specs=[
            pl.BlockSpec((tile_frames, 1, lane), lambda i: (i, 0, 0)),   # frame cos
            pl.BlockSpec((tile_frames, 1, lane), lambda i: (i, 0, 0)),   # frame sin
            pl.BlockSpec((pph, lane), lambda i: (0, 0)),                 # plane cos (resident)
            pl.BlockSpec((pph, lane), lambda i: (0, 0)),                 # plane sin (resident)
        ],
        out_specs=(out_spec, out_spec),
        compiler_params=pltpu.CompilerParams(
            dimension_semantics=("parallel",),
            vmem_limit_bytes=32 * 1024 * 1024,
        ),
    )(f_cos, f_sin, p_cos, p_sin)

    # contiguous row-major reshapes: free views, no lane split, no extra HBM pass
    return cos.reshape(1, 1, S, dh), sin.reshape(1, 1, S, dh)


# ---------------------------- NumPy reference ------------------------------ #

def reference(params, hidden_states):
    """Literal float64/complex transcription of WanRotaryPosEmbed.forward."""
    head_dim = params["attention_head_dim"]
    theta = params["theta"]
    max_seq_len = params["max_seq_len"]
    p_t, p_h, p_w = params["patch_size"]
    B, C, F_, H, W = hidden_states.shape
    ppf, pph, ppw = F_ // p_t, H // p_h, W // p_w

    h_dim = w_dim = 2 * (head_dim // 6)
    t_dim = head_dim - h_dim - w_dim

    def table(dim):
        inv = 1.0 / (theta ** (np.arange(0, dim, 2)[: dim // 2].astype(np.float64) / dim))
        ang = np.outer(np.arange(max_seq_len, dtype=np.float64), inv)
        return np.exp(1j * ang)     # == torch.polar(ones, ang)

    ft, fh, fw = table(t_dim), table(h_dim), table(w_dim)
    freqs_f = np.broadcast_to(ft[:ppf].reshape(ppf, 1, 1, -1),
                              (ppf, pph, ppw, t_dim // 2))
    freqs_h = np.broadcast_to(fh[:pph].reshape(1, pph, 1, -1),
                              (ppf, pph, ppw, h_dim // 2))
    freqs_w = np.broadcast_to(fw[:ppw].reshape(1, 1, ppw, -1),
                              (ppf, pph, ppw, w_dim // 2))
    freqs = np.concatenate([freqs_f, freqs_h, freqs_w], axis=-1)
    return freqs.reshape(1, 1, ppf * pph * ppw, -1)


# ----------------------------------- Main ----------------------------------- #

if __name__ == "__main__":
    key = jax.random.PRNGKey(0)

    ATTENTION_HEAD_DIM = 64          # -> t/h/w half-dims = 12/10/10, Dh = 32
    PATCH_SIZE = (1, 2, 2)
    MAX_SEQ_LEN = 32
    THETA = 10000.0

    # hidden_states only contributes its shape: (B, C, F, H, W)
    hidden_states = jax.random.normal(key, (2, 16, 4, 8, 8), jnp.float32)
    # -> ppf=4, pph=4, ppw=4, S=64 tokens; output rows are ppw*Dh = 128 lanes

    params = make_rope_params(ATTENTION_HEAD_DIM, PATCH_SIZE, MAX_SEQ_LEN, THETA)

    cos, sin = wan_rotary_pos_embed(params, hidden_states)   # grid of 2 frame-tiles
    cos, sin = jax.block_until_ready((cos, sin))

    ref = reference(params, hidden_states)           # complex128, (1,1,S,Dh)
    np.testing.assert_allclose(np.asarray(cos), ref.real.astype(np.float32),
                               rtol=1e-6, atol=1e-6)
    np.testing.assert_allclose(np.asarray(sin), ref.imag.astype(np.float32),
                               rtol=1e-6, atol=1e-6)

    print("KERNEL_OK")
</pallas_src>

<mosaic_0001>
module attributes {stable_mosaic.version = 11 : i64} {
  func.func @_rope_broadcast_kernel(%arg0: i32, %arg1: memref<2x1x128xf32, #tpu.memory_space<vmem>>, %arg2: memref<2x1x128xf32, #tpu.memory_space<vmem>>, %arg3: memref<4x128xf32, #tpu.memory_space<vmem>>, %arg4: memref<4x128xf32, #tpu.memory_space<vmem>>, %arg5: memref<2x4x128xf32, #tpu.memory_space<vmem>>, %arg6: memref<2x4x128xf32, #tpu.memory_space<vmem>>) attributes {dimension_semantics = [#tpu.dimension_semantics<parallel>], iteration_bounds = array<i64: 2>, scalar_prefetch = 0 : i64, scratch_operands = 0 : i64, tpu.core_type = #tpu.core_type<tc>, window_params = [{transform_indices = @transform_0, window_bounds = array<i64: 2, 1, 128>}, {transform_indices = @transform_1, window_bounds = array<i64: 2, 1, 128>}, {pipeline_mode = #tpu.pipeline_mode<synchronous>, transform_indices = @transform_2, window_bounds = array<i64: 4, 128>}, {pipeline_mode = #tpu.pipeline_mode<synchronous>, transform_indices = @transform_3, window_bounds = array<i64: 4, 128>}, {transform_indices = @transform_4, window_bounds = array<i64: 2, 4, 128>}, {transform_indices = @transform_5, window_bounds = array<i64: 2, 4, 128>}]} {
    %c0 = arith.constant 0 : index
    %c0_0 = arith.constant 0 : index
    %c0_1 = arith.constant 0 : index
    %0 = vector.load %arg1[%c0, %c0_0, %c0_1] : memref<2x1x128xf32, #tpu.memory_space<vmem>>, vector<2x1x128xf32>
    %c0_2 = arith.constant 0 : index
    %c0_3 = arith.constant 0 : index
    %1 = vector.load %arg3[%c0_2, %c0_3] : memref<4x128xf32, #tpu.memory_space<vmem>>, vector<4x128xf32>
    %2 = vector.shape_cast %1 : vector<4x128xf32> to vector<1x4x128xf32>
    %3 = vector.broadcast %0 : vector<2x1x128xf32> to vector<2x4x128xf32>
    %4 = vector.broadcast %2 : vector<1x4x128xf32> to vector<2x4x128xf32>
    %5 = arith.addf %3, %4 : vector<2x4x128xf32>
    %c0_4 = arith.constant 0 : index
    %c0_5 = arith.constant 0 : index
    %c0_6 = arith.constant 0 : index
    %6 = vector.load %arg5[%c0_4, %c0_5, %c0_6] : memref<2x4x128xf32, #tpu.memory_space<vmem>>, vector<2x4x128xf32>
    tpu.vector_store %arg5[%c0_4, %c0_5, %c0_6], %5 {strides = array<i32>} : memref<2x4x128xf32, #tpu.memory_space<vmem>>, vector<2x4x128xf32>,
    %c0_7 = arith.constant 0 : index
    %c0_8 = arith.constant 0 : index
    %c0_9 = arith.constant 0 : index
    %7 = vector.load %arg2[%c0_7, %c0_8, %c0_9] : memref<2x1x128xf32, #tpu.memory_space<vmem>>, vector<2x1x128xf32>
    %c0_10 = arith.constant 0 : index
    %c0_11 = arith.constant 0 : index
    %8 = vector.load %arg4[%c0_10, %c0_11] : memref<4x128xf32, #tpu.memory_space<vmem>>, vector<4x128xf32>
    %9 = vector.shape_cast %8 : vector<4x128xf32> to vector<1x4x128xf32>
    %10 = vector.broadcast %7 : vector<2x1x128xf32> to vector<2x4x128xf32>
    %11 = vector.broadcast %9 : vector<1x4x128xf32> to vector<2x4x128xf32>
    %12 = arith.addf %10, %11 : vector<2x4x128xf32>
    %c0_12 = arith.constant 0 : index
    %c0_13 = arith.constant 0 : index
    %c0_14 = arith.constant 0 : index
    %13 = vector.load %arg6[%c0_12, %c0_13, %c0_14] : memref<2x4x128xf32, #tpu.memory_space<vmem>>, vector<2x4x128xf32>
    tpu.vector_store %arg6[%c0_12, %c0_13, %c0_14], %12 {strides = array<i32>} : memref<2x4x128xf32, #tpu.memory_space<vmem>>, vector<2x4x128xf32>,
    return
  }
  func.func @transform_0(%arg0: i32) -> (i32, i32, i32) {
    %c0_i32 = arith.constant 0 : i32
    %c0_i32_0 = arith.constant 0 : i32
    %c0_i32_1 = arith.constant 0 : i32
    return %arg0, %c0_i32, %c0_i32_0 : i32, i32, i32
  }
  func.func @transform_1(%arg0: i32) -> (i32, i32, i32) {
    %c0_i32 = arith.constant 0 : i32
    %c0_i32_0 = arith.constant 0 : i32
    %c0_i32_1 = arith.constant 0 : i32
    return %arg0, %c0_i32, %c0_i32_0 : i32, i32, i32
  }
  func.func @transform_2(%arg0: i32) -> (i32, i32) {
    %c0_i32 = arith.constant 0 : i32
    %c0_i32_0 = arith.constant 0 : i32
    %c0_i32_1 = arith.constant 0 : i32
    return %c0_i32, %c0_i32_0 : i32, i32
  }
  func.func @transform_3(%arg0: i32) -> (i32, i32) {
    %c0_i32 = arith.constant 0 : i32
    %c0_i32_0 = arith.constant 0 : i32
    %c0_i32_1 = arith.constant 0 : i32
    return %c0_i32, %c0_i32_0 : i32, i32
  }
  func.func @transform_4(%arg0: i32) -> (i32, i32, i32) {
    %c0_i32 = arith.constant 0 : i32
    %c0_i32_0 = arith.constant 0 : i32
    %c0_i32_1 = arith.constant 0 : i32
    return %arg0, %c0_i32, %c0_i32_0 : i32, i32, i32
  }
  func.func @transform_5(%arg0: i32) -> (i32, i32, i32) {
    %c0_i32 = arith.constant 0 : i32
    %c0_i32_0 = arith.constant 0 : i32
    %c0_i32_1 = arith.constant 0 : i32
    return %arg0, %c0_i32, %c0_i32_0 : i32, i32, i32
  }
}

</mosaic_0001>

<bundles_post_ra>
// kernel: tpu_custom_call.1
= control target key start
LH: loop header
LB: loop body
LE: loop exit
PB: predicated region body
PF: predicated region fallthrough
CT: control target
= control target key end

     0   :  { %s1121_s0 = inlined_call_operand.hbm [shape: f32[4,1,128], index: 0, kind: input, shape index: {}]   ;;  %s1122_s1 = inlined_call_operand.hbm [shape: f32[4,1,128], index: 1, kind: input, shape index: {}]   ;;  %s1123_s2 = inlined_call_operand.hbm [shape: f32[4,128], index: 2, kind: input, shape index: {}]   ;;  %s1124_s3 = inlined_call_operand.hbm [shape: f32[4,128], index: 3, kind: input, shape index: {}]   ;;  %s1125_s4 = inlined_call_operand.hbm [shape: f32[4,4,128], index: 4, kind: output, shape index: {0}]   ;;  %s1126_s5 = inlined_call_operand.hbm [shape: f32[4,4,128], index: 5, kind: output, shape index: {1}]  }
   0x1   :  { %1128 = sst [smem:[#allocation21_spill]] %s1123_s2 }
   0x2   :  { %1129 = sst [smem:[#allocation22_spill]] %s1124_s3 }
   0x3   :  { %11 = vsyncpa [#allocation3], 0 }
   0x4   :  { %13 = vsyncpa [#allocation3 + $0x1], 0 }
   0x5   :  { %14 = vsyncpa [#allocation6], 0 }
   0x6   :  { %16 = vsyncpa [#allocation6 + $0x1], 0 }
   0x7   :  { %17 = vsyncpa [#allocation9], 0 }
   0x8   :  { %18 = vsyncpa [#allocation4], 0 }
   0x9   :  { %20 = vsyncpa [#allocation4 + $0x1], 0 }
   0xa   :  { %21 = vsyncpa [#allocation12], 0 }
   0xb   :  { %23 = vsyncpa [#allocation12 + $0x1], 0  ;;  %s920_s18 = smov 0   ;;  %s922_s19 = smov 0  }
   0xc   :  { %s924_s20 = smov 0   ;;  %s926_s21 = smov 0  }
   0xd LB: > { %1130 = sst [smem:[#allocation19_spill]] %s878_s20  ;;  %s941_s22 = sadd.s32 4294967295, %s882_s21   ;;  %s882_s21 = sphi %s926_s21, %s1145_s21   ;;  %s878_s20 = sphi %s924_s20, %s1142_s20   ;;  %s874_s19 = sphi %s922_s19, %s1144_s19   ;;  %s870_s18 = sphi %s920_s18, %s1143_s18  }
   0xe   : > { %s541_s23 = sadd.s32 4294967294, %s882_s21   ;;  %s945_s24 = sadd.s32 1, %s882_s21  }
   0xf   : > { %s36_s25 = sadd.s32 1, %s878_s20  ;;  %s33_s26 = ssub.s32 %s882_s21, %s945_s24 }
  0x10   : > { %p43_p0 = scmp.ne.s32.totalorder %s878_s20, %s874_s19  ;;  %p34_p1 = scmp.eq.s32.totalorder %s33_s26, 0 }
  0x11   : > { %p44_p2 = scmp.eq.s32.totalorder %s882_s21, 0  ;;  %p49_p3 = scmp.ne.s32.totalorder %s874_s19, %s870_s18 }
  0x12   : > { %p50_p4 = scmp.eq.s32.totalorder %s941_s22, 0  ;;  %p141_p7 = scmp.eq.s32.totalorder %s941_s22, 1 }
  0x13   : > { %s957_s27 = scalar_select %p34_p1, %s878_s20, %s36_s25  }
  0x14   : > { %p959_p5 = por %p44_p2, %p43_p0  ;;  %p965_p6 = por %p50_p4, %p49_p3 }
  0x15   : > { %1131 = sst [smem:[#allocation20_spill]] %s957_s27  ;;  %p147_p8 = scmp.eq.s32.totalorder %s541_s23, 1 }
  0x16   : > { %p542_p9 = scmp.ge.s32.totalorder %s882_s21, 1  ;;  %p180_p10 = scmp.lt.s32.totalorder %s882_s21, 3 }
  0x17   : > { %p972_p11 = por %p141_p7, %p43_p0  ;;  %p976_p12 = por %p147_p8, %p49_p3 }
  0x18   : > { %p980_p13 = pnand %p542_p9, %p180_p10  ;;  %s1137_s2 = sld [smem:[#allocation21_spill]] }
  0x19   : > { %s884_s11 = smov [#allocation7]   ;;  %p606_p3 = scmp.lt.s32.totalorder %s882_s21, 2 }
  0x1a   : > { %p583_p1 = pneg %p980_p13  ;;  %s194_s12 = sshll.u32 %s884_s11, 4  ;;  %s195_s12 = int_to_ptr.vmem [resolvable:$true] %s194_s12 }
  0x1b   : > { %s1138_s3 = sld [smem:[#allocation22_spill]]  ;;  %p998_p7 = pnand %p606_p3, %p959_p5 }
  0x1c   : > { %p584_p2 = pnand %p583_p1, %p50_p4  ;;  %s885_s17 = smov [#allocation8]  }
  0x1d   : > { %s206_s23 = sshll.u32 %s885_s17, 4  ;;  %s217_s25 = sand.u32 1, %s878_s20   ;;  %s207_s23 = int_to_ptr.vmem [resolvable:$true] %s206_s23 }
  0x1e   : > { %s192_s10 = sshll.u32 %s1137_s2, 4  ;;  %s1003_s26 = sshll.u32 %s217_s25, 1  ;;  %s193_s10 = int_to_ptr.hbm [resolvable:$true] %s192_s10 }
  0x1f   : > { %586 = dma.hbm_to_vmem [thread:$0]  (!%p584_p2), %s193_s10, 64, %s195_s12, [#allocation6]  }
  0x20   : > { %s547_s8 = sshll.u32 %s882_s21, 1  ;;  %s221_s28 = scalar_lea.vmem [#allocation2], %s1003_s26 }
  0x21   : > { %s204_s15 = sshll.u32 %s1138_s3, 4  ;;  %s225_s10 = scalar_lea.hbm %s1121_s0, %s547_s8  ;;  %s205_s15 = int_to_ptr.hbm [resolvable:$true] %s204_s15 }
  0x22   : > { %589 = dma.hbm_to_vmem [thread:$0]  (!%p584_p2), %s205_s15, 64, %s207_s23, [#allocation9]  }
  0x23   : > { %s228_s12 = sshll.u32 %s221_s28, 4  ;;  %s226_s13 = sshll.u32 %s225_s10, 4  ;;  %s229_s12 = int_to_ptr.vmem [resolvable:$true] %s228_s12  ;;  %s227_s13 = int_to_ptr.hbm [resolvable:$true] %s226_s13 }
  0x24   : > { %s218_s14 = scalar_lea.sflag [#allocation3], %s217_s25  ;;  %s712_s17 = sshra.s32 %s227_s13, 4  ;;  %s713_s17 = int_to_ptr.hbm [resolvable:$true] %s712_s17 }
  0x25   : > { %s714_s2 = scalar_lea.hbm %s713_s17, 2  ;;  %p716_p8 = pneg %p998_p7 }
  0x26   : > { %p715_p5 = scmp.ne.s32.totalorder %s713_s17, %s714_s2  ;;  %s719_s9 = scalar_lea.hbm %s1121_s0, 4 }
  0x27   : > { %p720_p1 = scmp.lt.s32.totalorder %s713_s17, %s1121_s0  ;;  %p721_p2 = scmp.lt.s32.totalorder %s719_s9, %s714_s2 }
  0x28   : > { %p717_p9 = pnand %p716_p8, %p715_p5 }
  0x29   : > { %p722_p3 = por %p721_p2, %p720_p1 }
  0x2a   : > { %p718_p10 = pneg %p717_p9 }
  0x2c   : > { %p723_p0 = pnand %p722_p3, %p718_p10 }
  0x2e   : > { %726 = shalt.err (!%p723_p0)
}
  0x2f   : > { %s886_s25 = smov 16   ;;  %s887_s10 = smov 1  }
  0x30   : > { %593 = dma.hbm_to_vmem [thread:$0]  (!%p998_p7), %s227_s13, 32, %s229_s12, %s218_s14, %s886_s25, %s886_s25, %s887_s10  }
  0x31   : > { %s246_s15 = scalar_lea.hbm %s1122_s1, %s547_s8  ;;  %s242_s23 = scalar_lea.vmem [#allocation5], %s1003_s26 }
  0x32   : > { %s249_s20 = sshll.u32 %s242_s23, 4  ;;  %s247_s11 = sshll.u32 %s246_s15, 4  ;;  %s250_s20 = int_to_ptr.vmem [resolvable:$true] %s249_s20  ;;  %s248_s11 = int_to_ptr.hbm [resolvable:$true] %s247_s11 }
  0x33   : > { %s238_s2 = sand.u32 1, %s882_s21   ;;  %s742_s9 = sshra.s32 %s248_s11, 4  ;;  %s743_s9 = int_to_ptr.hbm [resolvable:$true] %s742_s9 }
  0x34   : > { %s239_s17 = scalar_lea.sflag [#allocation6], %s238_s2  ;;  %s744_s28 = scalar_lea.hbm %s743_s9, 2 }
  0x35   : > { %p745_p0 = scmp.ne.s32.totalorder %s743_s9, %s744_s28  ;;  %s749_s3 = scalar_lea.hbm %s1122_s1, 4 }
  0x36   : > { %p750_p10 = scmp.lt.s32.totalorder %s743_s9, %s1122_s1  ;;  %p751_p1 = scmp.lt.s32.totalorder %s749_s3, %s744_s28 }
  0x37   : > { %p747_p5 = pnand %p745_p0, %p716_p8 }
  0x38   : > { %p752_p2 = por %p751_p1, %p750_p10 }
  0x39   : > { %p748_p9 = pneg %p747_p5 }
  0x3b   : > { %p753_p3 = pnand %p752_p2, %p748_p9 }
  0x3d   : > { %756 = shalt.err (!%p753_p3)
}
  0x3e   : > { %596 = dma.hbm_to_vmem [thread:$0]  (!%p998_p7), %s248_s11, 32, %s250_s20, %s239_s17, %s886_s25, %s886_s25, %s887_s10  }
  0x3f   : > { %261 = sbr.rel (%p980_p13) target bundleno = 106 (0x6a), region = 36  ;;  %s1042_s8 = sand.u32 (!%p980_p13), 1, %s874_s19  }
  0x40   : > { %s551_s14 = sshll.u32 (!%p980_p13), %s1042_s8, 1  ;;  %s264_s15 = scalar_lea.sflag (!%p980_p13), [#allocation3], %s1042_s8 }
  0x41   : > { %s267_s23 = scalar_lea.vmem (!%p980_p13), [#allocation2], %s551_s14 }
  0x44   : > { %845 = dma.done.wait (%p965_p6), %s264_s15, 32  }
  0x45   : > { %847 = vsyncadd (%p965_p6), %s264_s15, 4294967264  ;;  %s273_s20 = sand.u32 1, %s941_s22   ;;  %s277_s7 = scalar_lea.vmem [#allocation5], %s551_s14 }
  0x46   : > { %s274_s16 = scalar_lea.sflag [#allocation6], %s273_s20 }
  0x47   : > { %849 = dma.done.wait (%p965_p6), %s274_s16, 32  }
  0x48   : > { %851 = vsyncadd (%p965_p6), %s274_s16, 4294967264 }
  0x49   : > { %853 = dma.done.wait (%p50_p4), [#allocation6], 64  }
  0x4a   : > { %855 = vsyncadd (%p50_p4), [#allocation6], 4294967232 }
  0x4b   : > { %857 = dma.done.wait (%p50_p4), [#allocation9], 64  }
  0x4c   : > { %859 = vsyncadd (%p50_p4), [#allocation9], 4294967232  ;;  %s555_s25 = sshll.u32 %s1042_s8, 3  ;;  %s565_s10 = sshll.u32 %s941_s22, 3  ;;  %v331_v0 = vld [vmem:[#allocation7] sm:$0xf] }
  0x4d   : > { %s317_s11 = scalar_lea.vmem [#allocation10], %s555_s25  ;;  %s372_s9 = scalar_lea.hbm %s1125_s4, %s565_s10  ;;  %v648_v1 = vld [vmem:[%s267_s23] ss:$0 sm:$0xff]  ;;  %v649_v2 = vld [vmem:[%s267_s23 + $0x1] ss:$0 sm:$0xff] }
  0x4e   : > { %s373_s2 = sshll.u32 %s317_s11, 4  ;;  %s324_s28 = scalar_lea.vmem [#allocation11], %s555_s25  ;;  %v338_v3 = vadd.f32 %v648_v1, %v331_v0  ;;  %v344_v4 = vld [vmem:[#allocation8] sm:$0xf]  ;;  %v650_v5 = vld [vmem:[%s277_s7] ss:$0 sm:$0xff]  ;;  %v339_v6 = vadd.f32 %v649_v2, %v331_v0  ;;  %s1071_s2 = int_to_ptr.vmem [resolvable:$true] %s373_s2 }
  0x4f   : > { %s390_s12 = sshll.u32 %s324_s28, 4  ;;  %s375_s13 = sshll.u32 %s372_s9, 4  ;;  %v651_v7 = vld [vmem:[%s277_s7 + $0x1] ss:$0 sm:$0xff]  ;;  %v351_v8 = vadd.f32 %v650_v5, %v344_v4  ;;  %s1073_s12 = int_to_ptr.vmem [resolvable:$true] %s390_s12  ;;  %s376_s13 = int_to_ptr.hbm [resolvable:$true] %s375_s13 }
  0x50   : > { %s389_s26 = scalar_lea.hbm %s1126_s5, %s565_s10  ;;  %340 = vst [vmem:[%s317_s11] sm:$0xf] %v338_v3  ;;  %v352_v9 = vadd.f32 %v651_v7, %v344_v4  ;;  %s356_s14 = scalar_lea.sflag [#allocation4], %s1042_s8 }
  0x51   : > { %s392_s22 = sshll.u32 %s389_s26, 4  ;;  %341 = vst [vmem:[%s317_s11 + $0x4] sm:$0xf] %v339_v6  ;;  %s786_s15 = sshra.s32 %s376_s13, 4  ;;  %s1075_s22 = int_to_ptr.hbm [resolvable:$true] %s392_s22  ;;  %s787_s15 = int_to_ptr.hbm [resolvable:$true] %s786_s15 }
  0x52   : > { %353 = vst [vmem:[%s324_s28] sm:$0xf] %v351_v8  ;;  %s788_s23 = scalar_lea.hbm %s787_s15, 8  ;;  %s792_s7 = scalar_lea.hbm %s1125_s4, 16 }
  0x53   : > { %354 = vst [vmem:[%s324_s28 + $0x4] sm:$0xf] %v352_v9  ;;  %p789_p4 = scmp.ne.s32.totalorder %s787_s15, %s788_s23  ;;  %p793_p7 = scmp.lt.s32.totalorder %s787_s15, %s1125_s4 }
  0x54   : > { %p794_p8 = scmp.lt.s32.totalorder %s792_s7, %s788_s23 }
  0x55   : > { %p790_p6 = pnand %p789_p4, %p972_p11 }
  0x56   : > { %p795_p0 = por %p794_p8, %p793_p7 }
  0x57   : > { %p791_p13 = pneg %p790_p6 }
  0x59   : > { %p796_p5 = pnand %p795_p0, %p791_p13 }
  0x5b   : > { %799 = shalt.err (!%p796_p5)
}
  0x5c   : > { %s888_s11 = smov 64   ;;  %s889_s29 = smov 4  }
  0x5d   : > { %579 = dma.vmem_to_hbm [thread:$0]  (%p972_p11), %s1071_s2, 128, %s376_s13, %s356_s14, %s888_s11, %s888_s11, %s889_s29  }
  0x5e   : > { %s361_s17 = scalar_lea.sflag [#allocation12], %s1042_s8  ;;  %s814_s9 = sshra.s32 %s1075_s22, 4  ;;  %s815_s9 = int_to_ptr.hbm [resolvable:$true] %s814_s9 }
  0x5f   : > { %s816_s28 = scalar_lea.hbm %s815_s9, 8  ;;  %s820_s26 = scalar_lea.hbm %s1126_s5, 16 }
  0x60   : > { %p817_p9 = scmp.ne.s32.totalorder %s815_s9, %s816_s28  ;;  %p821_p2 = scmp.lt.s32.totalorder %s815_s9, %s1126_s5 }
  0x61   : > { %p822_p3 = scmp.lt.s32.totalorder %s820_s26, %s816_s28 }
  0x62   : > { %p818_p10 = pnand %p817_p9, %p972_p11 }
  0x63   : > { %p823_p4 = por %p822_p3, %p821_p2 }
  0x64   : > { %p819_p1 = pneg %p818_p10 }
  0x66   : > { %p824_p6 = pnand %p823_p4, %p819_p1 }
  0x68   : > { %827 = shalt.err (!%p824_p6)
}
  0x69   : > { %580 = dma.vmem_to_hbm [thread:$0]  (%p972_p11), %s1073_s12, 128, %s1075_s22, %s361_s17, %s888_s11, %s888_s11, %s889_s29  }
  0x6a PF: > { %s407_s8 = sand.u32 1, %s870_s18   ;;  %p1140_p13 = scmp.ge.s32.totalorder %s882_s21, 2 }
  0x6b   : > { %s408_s2 = scalar_lea.sflag [#allocation4], %s407_s8 }
  0x6c   : > { %p598_p7 = pnand %p1140_p13, %p976_p12 }
  0x6e   : > { %p599_p8 = pneg %p598_p7 }
  0x70   : > { %861 = dma.done.wait (%p599_p8), %s408_s2, 128  }
  0x71   : > { %863 = vsyncadd (%p599_p8), %s408_s2, 4294967168  ;;  %s418_s13 = scalar_lea.sflag [#allocation12], %s407_s8 }
  0x72   : > { %865 = dma.done.wait (%p599_p8), %s418_s13, 128  }
  0x73   : > { %867 = vsyncadd (%p599_p8), %s418_s13, 4294967168  ;;  %s1141_s30 = sld [smem:[#allocation19_spill]]  ;;  %p26_p11 = scmp.ge.s32.totalorder %s945_s24, 4  }
  0x74   : > { %s1142_s20 = sld [smem:[#allocation20_spill]]  ;;  %s1143_s18 = smov %s874_s19 }
  0x75   : > { %s1145_s21 = smov %s945_s24  ;;  %28 = sbr.rel (!%p26_p11) target bundleno = 13 (0xd), region = 119 }
  0x79   : > { %s1144_s19 = smov %s1141_s30 }
  0x7a   :  { %424 = vsyncpa [#allocation3], 1 }
  0x7b   :  { %426 = vsyncpa [#allocation3 + $0x1], 1 }
  0x7c   :  { %427 = vsyncpa [#allocation6], 1 }
  0x7d   :  { %429 = vsyncpa [#allocation6 + $0x1], 1 }
  0x7e   :  { %430 = vsyncpa [#allocation9], 1 }
  0x7f   :  { %431 = vsyncpa [#allocation4], 1 }
  0x80   :  { %433 = vsyncpa [#allocation4 + $0x1], 1 }
  0x81   :  { %434 = vsyncpa [#allocation12], 1 }
  0x82   :  { %436 = vsyncpa [#allocation12 + $0x1], 1 }

</bundles_post_ra>
